<compile_context>
chip_gen: v7x
topology: tpu7x:2x2x1
jax: 0.10.0
libtpu: 0.0.40
codegen_flags: <defaults>
</compile_context>

<pallas_src>
import numpy as np
import jax
import jax.numpy as jnp
from jax.experimental import pallas as pl
from jax.experimental.pallas import tpu as pltpu


# ----------------------------- diffusion schedule -----------------------------
def make_schedule(time_steps, linear_start, linear_end):
    scale = 1000.0 / time_steps
    betas = jnp.linspace(scale * linear_start, scale * linear_end, time_steps,
                         dtype=jnp.float32)
    alphas = 1.0 - betas
    gammas = jnp.cumprod(alphas)
    return gammas


def time_embedding(t, wt, b1, hidden):
    """Sinusoidal embedding of t -> (B, Hd), with the denoiser's b1 folded in."""
    half = hidden // 2
    freqs = jnp.exp(-jnp.log(10000.0) * jnp.arange(half, dtype=jnp.float32) / half)
    ang = t.astype(jnp.float32)[:, None] * freqs[None, :]                  # (B, Hd/2)
    sin_emb = jnp.concatenate([jnp.sin(ang), jnp.cos(ang)], axis=-1)       # (B, Hd)
    return sin_emb @ wt + b1                                               # (B, Hd)


# ------------------------------ fused forward pass ------------------------------
def gaussian_diffusion_forward(x_nchw, t, noise_nchw, gammas, params, lane_block=128):
    """x_nchw, noise_nchw: (B, C, H, W) f32; t: (B,) int32. Returns scalar MSE loss."""
    B, C, H, W = x_nchw.shape
    HW = H * W
    Hd = params["w1"].shape[0]                           # w1: (Hd, C)
    assert HW % lane_block == 0
    G = HW // lane_block                                 # lane-split grid (=2 here)

    # -- schedule gather ('extract') + per-row (B*C,1) coefficient columns
    g = gammas[t].astype(jnp.float32)                    # (B,)
    coef_g = jnp.repeat(jnp.sqrt(g), C)[:, None]         # (B*C, 1)
    coef_1mg = jnp.repeat(jnp.sqrt(1.0 - g), C)[:, None] # (B*C, 1)

    # -- time embedding with b1 folded in: (Hd, B), sliced per batch in-kernel
    temb_t = time_embedding(t, params["wt"], params["b1"], Hd).T            # (Hd, B)

    # -- channels-first lane-dense slab: (B*C, HW) is a FREE reshape of NCHW
    x_flat = x_nchw.reshape(B * C, HW)
    n_flat = noise_nchw.reshape(B * C, HW)

    # -- weights: w1 stays f32 (VPU path); w2 pre-cast to bf16 (MXU operand)
    w1_f32 = params["w1"].astype(jnp.float32)            # (Hd, C)
    w2_bf16 = params["w2"].astype(jnp.bfloat16)          # (C, Hd)
    b2_f32 = params["b2"].astype(jnp.float32)            # (C, 1)

    inv_count = 1.0 / float(B * C * H * W)

    def kernel(x_ref, noise_ref, cg_ref, c1_ref, w1_ref, temb_ref, w2_ref, b2_ref,
               out_ref):
        # x_ref / noise_ref : (B*C, L) f32   -- full (8,128) vreg fill
        # cg/c1             : (B*C, 1) f32
        # w1                : (Hd, C)  f32   (resident)
        # temb              : (Hd, B)  f32   (b1 folded, resident)
        # w2                : (C, Hd)  bf16  (resident)
        # b2                : (C, 1)   f32
        # out               : (1, 1, L) f32  -- per-step partial loss (scalar splat)
        x = x_ref[...]
        n = noise_ref[...]

        # q_sample at full sublane occupancy (f32, VPU)
        x_noisy = cg_ref[...] * x + c1_ref[...] * n       # (B*C, L)

        w1 = w1_ref[...]                                  # (Hd, C)
        temb = temb_ref[...]                              # (Hd, B)
        w2 = w2_ref[...]                                  # (C, Hd) bf16
        b2 = b2_ref[...]                                  # (C, 1)

        total = jnp.float32(0.0)
        for b in range(B):                                # static unroll, B=2
            # first 1x1 conv: K=C=4 -> keep off the MXU, 4 broadcast FMAs on the VPU
            acc = w1[:, 0:1] * x_noisy[b * C + 0:b * C + 1, :]        # (Hd, L)
            for c in range(1, C):
                acc = acc + w1[:, c:c + 1] * x_noisy[b * C + c:b * C + c + 1, :]
            h = acc + temb[:, b:b + 1]                    # per-batch time emb (+b1)
            h = h * jax.nn.sigmoid(h)                     # SiLU (f32 EUP/VPU)

            # second 1x1 conv: K=Hd=32 -> MXU, bf16 operands, f32 accumulation
            y = jnp.dot(w2, h.astype(jnp.bfloat16),
                        preferred_element_type=jnp.float32)           # (C, L)
            y = y + b2

            err = n[b * C:(b + 1) * C, :] - y
            total = total + jnp.sum(err * err)            # in-kernel XLU reduce

        out_ref[...] = jnp.broadcast_to(total, (1, 1, lane_block))

    partials = pl.pallas_call(
        kernel,
        out_shape=jax.ShapeDtypeStruct((G, 1, lane_block), jnp.float32),
        grid_spec=pltpu.PrefetchScalarGridSpec(
            num_scalar_prefetch=0,
            grid=(G,),
            in_specs=[
                pl.BlockSpec((B * C, lane_block), lambda i: (0, i)),   # x slab
                pl.BlockSpec((B * C, lane_block), lambda i: (0, i)),   # noise slab
                pl.BlockSpec((B * C, 1), lambda i: (0, 0)),            # sqrt(gamma)
                pl.BlockSpec((B * C, 1), lambda i: (0, 0)),            # sqrt(1-gamma)
                pl.BlockSpec((Hd, C), lambda i: (0, 0)),               # w1 f32 (resident)
                pl.BlockSpec((Hd, B), lambda i: (0, 0)),               # temb (+b1)
                pl.BlockSpec((C, Hd), lambda i: (0, 0)),               # w2 bf16 (resident)
                pl.BlockSpec((C, 1), lambda i: (0, 0)),                # b2
            ],
            out_specs=pl.BlockSpec((1, 1, lane_block), lambda i: (i, 0, 0)),
        ),
        compiler_params=pltpu.CompilerParams(
            dimension_semantics=("parallel",)),           # 2 lane-split steps feed both v7x TCs
    )(x_flat, n_flat, coef_g, coef_1mg, w1_f32, temb_t, w2_bf16, b2_f32)

    # finish the mean: add G(=2) numbers + scale — one tiny XLA op.
    return jnp.sum(partials[:, 0, 0]) * inv_count


# ------------------------------ pure-JAX reference -----------------------------
def reference_forward(x_nchw, t, noise_nchw, gammas, params):
    B, C, H, W = x_nchw.shape
    HW = H * W
    Hd = params["w1"].shape[0]

    g = gammas[t].astype(jnp.float32).reshape(B, 1, 1)
    x_cf = x_nchw.reshape(B, C, HW)
    n_cf = noise_nchw.reshape(B, C, HW)
    x_noisy = jnp.sqrt(g) * x_cf + jnp.sqrt(1.0 - g) * n_cf

    temb = time_embedding(t, params["wt"], params["b1"], Hd)        # (B, Hd)

    # layer 1 in f32 (matches the kernel's VPU FMA path)
    h = jnp.sum(params["w1"][None, :, :, None] * x_noisy[:, None, :, :],
                axis=2)                                             # (B, Hd, HW)
    h = h + temb[:, :, None]
    h = h * jax.nn.sigmoid(h)

    # layer 2: bf16 operands, f32 accumulation (matches the kernel's MXU path)
    y = jnp.einsum("cd,bdh->bch",
                   params["w2"].astype(jnp.bfloat16),
                   h.astype(jnp.bfloat16),
                   preferred_element_type=jnp.float32)              # (B, C, HW)
    y = y + params["b2"][None, :, :]

    return jnp.mean((n_cf - y) ** 2)


# ------------------------------------ main -------------------------------------
if __name__ == "__main__":
    B, C, H, W = 2, 4, 16, 16
    Hd = 32
    TIME_STEPS = 100
    BETAS = {"linear_start": 1e-4, "linear_end": 2e-2}

    gammas = make_schedule(TIME_STEPS, BETAS["linear_start"], BETAS["linear_end"])

    key = jax.random.PRNGKey(0)
    kx, kn, kt, kw1, kb1, kw2, kb2, kwt = jax.random.split(key, 8)

    x = jax.random.normal(kx, (B, C, H, W), dtype=jnp.float32)
    noise = jax.random.normal(kn, (B, C, H, W), dtype=jnp.float32)
    t = jax.random.randint(kt, (B,), 0, TIME_STEPS, dtype=jnp.int32)

    params = {
        # channels-first convention: h = w1 @ x  (Hd,C)@(C,HW);  y = w2 @ h  (C,Hd)@(Hd,HW)
        "w1": jax.random.normal(kw1, (Hd, C), dtype=jnp.float32) * (1.0 / np.sqrt(C)),
        "b1": jax.random.normal(kb1, (Hd,), dtype=jnp.float32) * 0.1,
        "w2": jax.random.normal(kw2, (C, Hd), dtype=jnp.float32) * (1.0 / np.sqrt(Hd)),
        "b2": jax.random.normal(kb2, (C, 1), dtype=jnp.float32) * 0.1,
        "wt": jax.random.normal(kwt, (Hd, Hd), dtype=jnp.float32) * (1.0 / np.sqrt(Hd)),
    }

    loss = gaussian_diffusion_forward(x, t, noise, gammas, params)
    loss = jax.block_until_ready(loss)

    loss_ref = reference_forward(x, t, noise, gammas, params)
    loss_ref = jax.block_until_ready(loss_ref)

    np.testing.assert_allclose(np.asarray(loss), np.asarray(loss_ref),
                               rtol=2e-4, atol=1e-5)
    print("KERNEL_OK")
</pallas_src>

<mosaic_0001>
module attributes {stable_mosaic.version = 11 : i64} {
  func.func @kernel(%arg0: i32, %arg1: memref<8x128xf32, #tpu.memory_space<vmem>>, %arg2: memref<8x128xf32, #tpu.memory_space<vmem>>, %arg3: memref<8x1xf32, #tpu.memory_space<vmem>>, %arg4: memref<8x1xf32, #tpu.memory_space<vmem>>, %arg5: memref<32x4xf32, #tpu.memory_space<vmem>>, %arg6: memref<32x2xf32, #tpu.memory_space<vmem>>, %arg7: memref<4x32xbf16, #tpu.memory_space<vmem>>, %arg8: memref<4x1xf32, #tpu.memory_space<vmem>>, %arg9: memref<1x1x128xf32, #tpu.memory_space<vmem>>) attributes {dimension_semantics = [#tpu.dimension_semantics<parallel>], iteration_bounds = array<i64: 2>, scalar_prefetch = 0 : i64, scratch_operands = 0 : i64, tpu.core_type = #tpu.core_type<tc>, window_params = [{transform_indices = @transform_0, window_bounds = array<i64: 8, 128>}, {transform_indices = @transform_1, window_bounds = array<i64: 8, 128>}, {pipeline_mode = #tpu.pipeline_mode<synchronous>, transform_indices = @transform_2, window_bounds = array<i64: 8, 1>}, {pipeline_mode = #tpu.pipeline_mode<synchronous>, transform_indices = @transform_3, window_bounds = array<i64: 8, 1>}, {pipeline_mode = #tpu.pipeline_mode<synchronous>, transform_indices = @transform_4, window_bounds = array<i64: 32, 4>}, {pipeline_mode = #tpu.pipeline_mode<synchronous>, transform_indices = @transform_5, window_bounds = array<i64: 32, 2>}, {pipeline_mode = #tpu.pipeline_mode<synchronous>, transform_indices = @transform_6, window_bounds = array<i64: 4, 32>}, {pipeline_mode = #tpu.pipeline_mode<synchronous>, transform_indices = @transform_7, window_bounds = array<i64: 4, 1>}, {transform_indices = @transform_8, window_bounds = array<i64: 1, 1, 128>}]} {
    %c0 = arith.constant 0 : index
    %c0_0 = arith.constant 0 : index
    %0 = vector.load %arg1[%c0, %c0_0] : memref<8x128xf32, #tpu.memory_space<vmem>>, vector<8x128xf32>
    %c0_1 = arith.constant 0 : index
    %c0_2 = arith.constant 0 : index
    %1 = vector.load %arg2[%c0_1, %c0_2] : memref<8x128xf32, #tpu.memory_space<vmem>>, vector<8x128xf32>
    %c0_3 = arith.constant 0 : index
    %c0_4 = arith.constant 0 : index
    %2 = vector.load %arg3[%c0_3, %c0_4] : memref<8x1xf32, #tpu.memory_space<vmem>>, vector<8x1xf32>
    %3 = vector.broadcast %2 : vector<8x1xf32> to vector<8x128xf32>
    %4 = arith.mulf %3, %0 : vector<8x128xf32>
    %c0_5 = arith.constant 0 : index
    %c0_6 = arith.constant 0 : index
    %5 = vector.load %arg4[%c0_5, %c0_6] : memref<8x1xf32, #tpu.memory_space<vmem>>, vector<8x1xf32>
    %6 = vector.broadcast %5 : vector<8x1xf32> to vector<8x128xf32>
    %7 = arith.mulf %6, %1 : vector<8x128xf32>
    %8 = arith.addf %4, %7 : vector<8x128xf32>
    %c0_7 = arith.constant 0 : index
    %c0_8 = arith.constant 0 : index
    %9 = vector.load %arg5[%c0_7, %c0_8] : memref<32x4xf32, #tpu.memory_space<vmem>>, vector<32x4xf32>
    %c0_9 = arith.constant 0 : index
    %c0_10 = arith.constant 0 : index
    %10 = vector.load %arg6[%c0_9, %c0_10] : memref<32x2xf32, #tpu.memory_space<vmem>>, vector<32x2xf32>
    %c0_11 = arith.constant 0 : index
    %c0_12 = arith.constant 0 : index
    %11 = vector.load %arg7[%c0_11, %c0_12] : memref<4x32xbf16, #tpu.memory_space<vmem>>, vector<4x32xbf16>
    %c0_13 = arith.constant 0 : index
    %c0_14 = arith.constant 0 : index
    %12 = vector.load %arg8[%c0_13, %c0_14] : memref<4x1xf32, #tpu.memory_space<vmem>>, vector<4x1xf32>
    %13 = vector.extract_strided_slice %9 {offsets = [0, 0], sizes = [32, 1], strides = [1, 1]} : vector<32x4xf32> to vector<32x1xf32>
    %14 = vector.extract_strided_slice %8 {offsets = [0, 0], sizes = [1, 128], strides = [1, 1]} : vector<8x128xf32> to vector<1x128xf32>
    %15 = vector.broadcast %13 : vector<32x1xf32> to vector<32x128xf32>
    %16 = vector.broadcast %14 : vector<1x128xf32> to vector<32x128xf32>
    %17 = arith.mulf %15, %16 : vector<32x128xf32>
    %18 = vector.extract_strided_slice %9 {offsets = [0, 1], sizes = [32, 1], strides = [1, 1]} : vector<32x4xf32> to vector<32x1xf32>
    %19 = vector.extract_strided_slice %8 {offsets = [1, 0], sizes = [1, 128], strides = [1, 1]} : vector<8x128xf32> to vector<1x128xf32>
    %20 = vector.broadcast %18 : vector<32x1xf32> to vector<32x128xf32>
    %21 = vector.broadcast %19 : vector<1x128xf32> to vector<32x128xf32>
    %22 = arith.mulf %20, %21 : vector<32x128xf32>
    %23 = arith.addf %17, %22 : vector<32x128xf32>
    %24 = vector.extract_strided_slice %9 {offsets = [0, 2], sizes = [32, 1], strides = [1, 1]} : vector<32x4xf32> to vector<32x1xf32>
    %25 = vector.extract_strided_slice %8 {offsets = [2, 0], sizes = [1, 128], strides = [1, 1]} : vector<8x128xf32> to vector<1x128xf32>
    %26 = vector.broadcast %24 : vector<32x1xf32> to vector<32x128xf32>
    %27 = vector.broadcast %25 : vector<1x128xf32> to vector<32x128xf32>
    %28 = arith.mulf %26, %27 : vector<32x128xf32>
    %29 = arith.addf %23, %28 : vector<32x128xf32>
    %30 = vector.extract_strided_slice %9 {offsets = [0, 3], sizes = [32, 1], strides = [1, 1]} : vector<32x4xf32> to vector<32x1xf32>
    %31 = vector.extract_strided_slice %8 {offsets = [3, 0], sizes = [1, 128], strides = [1, 1]} : vector<8x128xf32> to vector<1x128xf32>
    %32 = vector.broadcast %30 : vector<32x1xf32> to vector<32x128xf32>
    %33 = vector.broadcast %31 : vector<1x128xf32> to vector<32x128xf32>
    %34 = arith.mulf %32, %33 : vector<32x128xf32>
    %35 = arith.addf %29, %34 : vector<32x128xf32>
    %36 = vector.extract_strided_slice %10 {offsets = [0, 0], sizes = [32, 1], strides = [1, 1]} : vector<32x2xf32> to vector<32x1xf32>
    %37 = vector.broadcast %36 : vector<32x1xf32> to vector<32x128xf32>
    %38 = arith.addf %35, %37 : vector<32x128xf32>
    %39 = arith.negf %38 : vector<32x128xf32>
    %40 = math.exp %39 : vector<32x128xf32>
    %cst = arith.constant 1.000000e+00 : f32
    %41 = vector.broadcast %cst : f32 to vector<32x128xf32>
    %42 = arith.addf %41, %40 : vector<32x128xf32>
    %43 = arith.divf %41, %42 : vector<32x128xf32>
    %44 = arith.mulf %38, %43 : vector<32x128xf32>
    %45 = arith.truncf %44 : vector<32x128xf32> to vector<32x128xbf16>
    %cst_15 = arith.constant dense<0.000000e+00> : vector<4x128xf32>
    %46 = tpu.matmul %11, %45, %cst_15 {dimension_numbers = #tpu.dot_dimension_numbers<[1], [0], [0], [1], [0, 0, 1, 1], [], []>} : vector<4x32xbf16>, vector<32x128xbf16>, vector<4x128xf32> -> vector<4x128xf32>
    %47 = vector.broadcast %12 : vector<4x1xf32> to vector<4x128xf32>
    %48 = arith.addf %46, %47 : vector<4x128xf32>
    %49 = vector.extract_strided_slice %1 {offsets = [0, 0], sizes = [4, 128], strides = [1, 1]} : vector<8x128xf32> to vector<4x128xf32>
    %50 = arith.subf %49, %48 : vector<4x128xf32>
    %51 = arith.mulf %50, %50 : vector<4x128xf32>
    %52 = vector.shape_cast %51 : vector<4x128xf32> to vector<1x4x128xf32>
    %cst_16 = arith.constant dense<0.000000e+00> : vector<1xf32>
    %53 = vector.multi_reduction <add>, %52, %cst_16 [1, 2] : vector<1x4x128xf32> to vector<1xf32>
    %54 = vector.shape_cast %53 : vector<1xf32> to vector<1x1x1xf32>
    %55 = vector.extract %54[0, 0, 0] : f32 from vector<1x1x1xf32>
    %cst_17 = arith.constant 0.000000e+00 : f32
    %56 = arith.addf %cst_17, %55 : f32
    %57 = vector.extract_strided_slice %9 {offsets = [0, 0], sizes = [32, 1], strides = [1, 1]} : vector<32x4xf32> to vector<32x1xf32>
    %58 = vector.extract_strided_slice %8 {offsets = [4, 0], sizes = [1, 128], strides = [1, 1]} : vector<8x128xf32> to vector<1x128xf32>
    %59 = vector.broadcast %57 : vector<32x1xf32> to vector<32x128xf32>
    %60 = vector.broadcast %58 : vector<1x128xf32> to vector<32x128xf32>
    %61 = arith.mulf %59, %60 : vector<32x128xf32>
    %62 = vector.extract_strided_slice %9 {offsets = [0, 1], sizes = [32, 1], strides = [1, 1]} : vector<32x4xf32> to vector<32x1xf32>
    %63 = vector.extract_strided_slice %8 {offsets = [5, 0], sizes = [1, 128], strides = [1, 1]} : vector<8x128xf32> to vector<1x128xf32>
    %64 = vector.broadcast %62 : vector<32x1xf32> to vector<32x128xf32>
    %65 = vector.broadcast %63 : vector<1x128xf32> to vector<32x128xf32>
    %66 = arith.mulf %64, %65 : vector<32x128xf32>
    %67 = arith.addf %61, %66 : vector<32x128xf32>
    %68 = vector.extract_strided_slice %9 {offsets = [0, 2], sizes = [32, 1], strides = [1, 1]} : vector<32x4xf32> to vector<32x1xf32>
    %69 = vector.extract_strided_slice %8 {offsets = [6, 0], sizes = [1, 128], strides = [1, 1]} : vector<8x128xf32> to vector<1x128xf32>
    %70 = vector.broadcast %68 : vector<32x1xf32> to vector<32x128xf32>
    %71 = vector.broadcast %69 : vector<1x128xf32> to vector<32x128xf32>
    %72 = arith.mulf %70, %71 : vector<32x128xf32>
    %73 = arith.addf %67, %72 : vector<32x128xf32>
    %74 = vector.extract_strided_slice %9 {offsets = [0, 3], sizes = [32, 1], strides = [1, 1]} : vector<32x4xf32> to vector<32x1xf32>
    %75 = vector.extract_strided_slice %8 {offsets = [7, 0], sizes = [1, 128], strides = [1, 1]} : vector<8x128xf32> to vector<1x128xf32>
    %76 = vector.broadcast %74 : vector<32x1xf32> to vector<32x128xf32>
    %77 = vector.broadcast %75 : vector<1x128xf32> to vector<32x128xf32>
    %78 = arith.mulf %76, %77 : vector<32x128xf32>
    %79 = arith.addf %73, %78 : vector<32x128xf32>
    %80 = vector.extract_strided_slice %10 {offsets = [0, 1], sizes = [32, 1], strides = [1, 1]} : vector<32x2xf32> to vector<32x1xf32>
    %81 = vector.broadcast %80 : vector<32x1xf32> to vector<32x128xf32>
    %82 = arith.addf %79, %81 : vector<32x128xf32>
    %83 = arith.negf %82 : vector<32x128xf32>
    %84 = math.exp %83 : vector<32x128xf32>
    %cst_18 = arith.constant 1.000000e+00 : f32
    %85 = vector.broadcast %cst_18 : f32 to vector<32x128xf32>
    %86 = arith.addf %85, %84 : vector<32x128xf32>
    %87 = arith.divf %85, %86 : vector<32x128xf32>
    %88 = arith.mulf %82, %87 : vector<32x128xf32>
    %89 = arith.truncf %88 : vector<32x128xf32> to vector<32x128xbf16>
    %cst_19 = arith.constant dense<0.000000e+00> : vector<4x128xf32>
    %90 = tpu.matmul %11, %89, %cst_19 {dimension_numbers = #tpu.dot_dimension_numbers<[1], [0], [0], [1], [0, 0, 1, 1], [], []>} : vector<4x32xbf16>, vector<32x128xbf16>, vector<4x128xf32> -> vector<4x128xf32>
    %91 = vector.broadcast %12 : vector<4x1xf32> to vector<4x128xf32>
    %92 = arith.addf %90, %91 : vector<4x128xf32>
    %93 = vector.extract_strided_slice %1 {offsets = [4, 0], sizes = [4, 128], strides = [1, 1]} : vector<8x128xf32> to vector<4x128xf32>
    %94 = arith.subf %93, %92 : vector<4x128xf32>
    %95 = arith.mulf %94, %94 : vector<4x128xf32>
    %96 = vector.shape_cast %95 : vector<4x128xf32> to vector<1x4x128xf32>
    %cst_20 = arith.constant dense<0.000000e+00> : vector<1xf32>
    %97 = vector.multi_reduction <add>, %96, %cst_20 [1, 2] : vector<1x4x128xf32> to vector<1xf32>
    %98 = vector.shape_cast %97 : vector<1xf32> to vector<1x1x1xf32>
    %99 = vector.extract %98[0, 0, 0] : f32 from vector<1x1x1xf32>
    %100 = arith.addf %56, %99 : f32
    %101 = vector.broadcast %100 : f32 to vector<1x1x128xf32>
    %c0_21 = arith.constant 0 : index
    %c0_22 = arith.constant 0 : index
    %c0_23 = arith.constant 0 : index
    %102 = vector.load %arg9[%c0_21, %c0_22, %c0_23] : memref<1x1x128xf32, #tpu.memory_space<vmem>>, vector<1x1x128xf32>
    tpu.vector_store %arg9[%c0_21, %c0_22, %c0_23], %101 {strides = array<i32>} : memref<1x1x128xf32, #tpu.memory_space<vmem>>, vector<1x1x128xf32>,
    return
  }
  func.func @transform_0(%arg0: i32) -> (i32, i32) {
    %c0_i32 = arith.constant 0 : i32
    %c0_i32_0 = arith.constant 0 : i32
    return %c0_i32, %arg0 : i32, i32
  }
  func.func @transform_1(%arg0: i32) -> (i32, i32) {
    %c0_i32 = arith.constant 0 : i32
    %c0_i32_0 = arith.constant 0 : i32
    return %c0_i32, %arg0 : i32, i32
  }
  func.func @transform_2(%arg0: i32) -> (i32, i32) {
    %c0_i32 = arith.constant 0 : i32
    %c0_i32_0 = arith.constant 0 : i32
    %c0_i32_1 = arith.constant 0 : i32
    return %c0_i32, %c0_i32_0 : i32, i32
  }
  func.func @transform_3(%arg0: i32) -> (i32, i32) {
    %c0_i32 = arith.constant 0 : i32
    %c0_i32_0 = arith.constant 0 : i32
    %c0_i32_1 = arith.constant 0 : i32
    return %c0_i32, %c0_i32_0 : i32, i32
  }
  func.func @transform_4(%arg0: i32) -> (i32, i32) {
    %c0_i32 = arith.constant 0 : i32
    %c0_i32_0 = arith.constant 0 : i32
    %c0_i32_1 = arith.constant 0 : i32
    return %c0_i32, %c0_i32_0 : i32, i32
  }
  func.func @transform_5(%arg0: i32) -> (i32, i32) {
    %c0_i32 = arith.constant 0 : i32
    %c0_i32_0 = arith.constant 0 : i32
    %c0_i32_1 = arith.constant 0 : i32
    return %c0_i32, %c0_i32_0 : i32, i32
  }
  func.func @transform_6(%arg0: i32) -> (i32, i32) {
    %c0_i32 = arith.constant 0 : i32
    %c0_i32_0 = arith.constant 0 : i32
    %c0_i32_1 = arith.constant 0 : i32
    return %c0_i32, %c0_i32_0 : i32, i32
  }
  func.func @transform_7(%arg0: i32) -> (i32, i32) {
    %c0_i32 = arith.constant 0 : i32
    %c0_i32_0 = arith.constant 0 : i32
    %c0_i32_1 = arith.constant 0 : i32
    return %c0_i32, %c0_i32_0 : i32, i32
  }
  func.func @transform_8(%arg0: i32) -> (i32, i32, i32) {
    %c0_i32 = arith.constant 0 : i32
    %c0_i32_0 = arith.constant 0 : i32
    %c0_i32_1 = arith.constant 0 : i32
    return %arg0, %c0_i32, %c0_i32_0 : i32, i32, i32
  }
}

</mosaic_0001>

<bundles_post_ra>
// kernel: tpu_custom_call.1
= control target key start
LH: loop header
LB: loop body
LE: loop exit
PB: predicated region body
PF: predicated region fallthrough
CT: control target
= control target key end

     0   :  { %13 = vsyncpa [#allocation3], 0  ;;  %s1307_s0 = inlined_call_operand.vmem [shape: f32[8,256], index: 0, kind: input, shape index: {}]   ;;  %s1308_s1 = inlined_call_operand.vmem [shape: f32[8,256], index: 1, kind: input, shape index: {}]   ;;  %s1309_s2 = inlined_call_operand.vmem [shape: f32[8,1], index: 2, kind: input, shape index: {}]   ;;  %s1310_s3 = inlined_call_operand.vmem [shape: f32[8,1], index: 3, kind: input, shape index: {}]   ;;  %s1311_s4 = inlined_call_operand.vmem [shape: f32[32,4], index: 4, kind: input, shape index: {}]   ;;  %s1312_s5 = inlined_call_operand.vmem [shape: f32[32,2], index: 5, kind: input, shape index: {}]   ;;  %s1313_s6 = inlined_call_operand.vmem [shape: bf16[4,32], index: 6, kind: input, shape index: {}]   ;;  %s1314_s7 = inlined_call_operand.vmem [shape: f32[4,1], index: 7, kind: input, shape index: {}]   ;;  %s1315_s8 = inlined_call_operand.hbm [shape: f32[2,1,128], index: 8, kind: output, shape index: {}]  }
   0x1   :  { %15 = vsyncpa [#allocation3 + $0x1], 0  ;;  %s1065_s27 = smov 0   ;;  %s1067_s28 = smov 0  }
   0x2   :  { %s1069_s29 = smov 0   ;;  %s1071_s30 = smov 0  }
   0x3 LB: > { %s1086_s9 = sadd.s32 4294967295, %s1011_s30   ;;  %s809_s10 = sadd.s32 4294967294, %s1011_s30   ;;  %s1011_s30 = sphi %s1071_s30, %s1321_s30   ;;  %s1007_s29 = sphi %s1069_s29, %s1320_s29   ;;  %s1003_s28 = sphi %s1067_s28, %s1319_s28   ;;  %s999_s27 = sphi %s1065_s27, %s1318_s27  }
   0x4   : > { %s1090_s11 = sadd.s32 1, %s1011_s30   ;;  %s206_s12 = sadd.s32 1, %s1007_s29 }
   0x5   : > { %s203_s13 = ssub.s32 %s1011_s30, %s1090_s11  ;;  %p216_p0 = scmp.ne.s32.totalorder %s1007_s29, %s1003_s28 }
   0x6   : > { %p204_p1 = scmp.eq.s32.totalorder %s203_s13, 0  ;;  %p217_p2 = scmp.eq.s32.totalorder %s1086_s9, 1 }
   0x7   : > { %p222_p3 = scmp.ne.s32.totalorder %s1003_s28, %s999_s27  ;;  %p223_p4 = scmp.eq.s32.totalorder %s809_s10, 1 }
   0x8   : > { %s1101_s14 = scalar_select %p204_p1, %s1007_s29, %s206_s12  }
   0x9   : > { %p1103_p5 = por %p217_p2, %p216_p0  ;;  %p1107_p6 = por %p223_p4, %p222_p3 }
   0xa   : > { %p812_p7 = scmp.ge.s32.totalorder %s1011_s30, 1  ;;  %p273_p8 = scmp.lt.s32.totalorder %s1011_s30, 3 }
   0xc   : > { %p274_p9 = pnand %p812_p7, %p273_p8 }
   0xd   : > { %v335_v0 = vld [vmem:[%s1311_s4] sm:$0xff] (!%p274_p9)  ;;  %v1013_v2 = vmov (!%p274_p9), 0   ;;  %v336_v3 = vld [vmem:[%s1311_s4 + $0x8] sm:$0xff] (!%p274_p9)  ;;  %v1014_v5 = vmov (!%p274_p9), 1   ;;  %v1015_v6 = vmov (!%p274_p9), 2   ;;  %v1016_v7 = vmov (!%p274_p9), 3  }
   0xe   : > { %277 = sbr.rel (%p274_p9) target bundleno = 693 (0x2b5), region = 52  ;;  %v320_v1 = vld [vmem:[%s1309_s2] sm:$0xff] (!%p274_p9)  ;;  %900 = vset.pattern.permute.xlu1 (!%p274_p9), %v1013_v2  ;;  %899 = vset.pattern.permute.xlu0 (!%p274_p9), %v1013_v2  ;;  %v337_v8 = vld [vmem:[%s1311_s4 + $0x10] sm:$0xff] (!%p274_p9)  ;;  %v338_v9 = vld [vmem:[%s1311_s4 + $0x18] sm:$0xff] (!%p274_p9)  ;;  %v1017_v15 = vmov (!%p274_p9), 0.0   ;;  %vm1018_vm0 = vmmov (!%p274_p9), 0   ;;  %v365_v24 = vlaneseq (!%p274_p9) }
   0xf   : > { %347 = vperm.xlu1 (!%p274_p9), %900, %v335_v0   ;;  %323 = vperm.xlu0 (!%p274_p9), %899, %v320_v1   ;;  %v327_v4 = vld [vmem:[%s1310_s3] sm:$0xff] (!%p274_p9)  ;;  %v340_v11 = vld [vmem:[%s1312_s5 + $0x8] sm:$0xff] (!%p274_p9)  ;;  %v341_v12 = vld [vmem:[%s1312_s5 + $0x10] sm:$0xff] (!%p274_p9)  ;;  %p309_p10 = scmp.lt.s32.totalorder (!%p274_p9), %s1086_s9, 1  ;;  %vm516_vm1 = vcmask (!%p274_p9), 261120   ;;  %vm562_vm2 = vcmask (!%p274_p9), 1043456  }
  0x10   : > { %v339_v10 = vld [vmem:[%s1312_s5] sm:$0xff] (!%p274_p9)  ;;  %v342_v14 = vld [vmem:[%s1312_s5 + $0x18] sm:$0xff] (!%p274_p9)  ;;  %842 = vmatprep.subr.bf16.mxu1 (!%p274_p9), %v1017_v15  ;;  %834 = vmatprep.subr.bf16.mxu0 (!%p274_p9), %v1017_v15  ;;  %v366_v29 = vshrl.u32 (!%p274_p9), %v365_v24, 7  ;;  %s307_s23 = sand.u32 (!%p274_p9), 1, %s1003_s28   ;;  %s825_s24 = sshll.u32 (!%p274_p9), %s1086_s9, 4 }
  0x11   : > { %v344_v13 = vld [vmem:[%s1314_s7] sm:$0xf] (!%p274_p9)  ;;  %846 = vmatprep.mubr.msk.bf16.mxu1 (!%p274_p9), %vm1018_vm0, %v1017_v15  ;;  %838 = vmatprep.mubr.msk.bf16.mxu0 (!%p274_p9), %vm1018_vm0, %v1017_v15  ;;  %s1265_s19 = scalar_lea.hbm (!%p274_p9), %s1315_s8, %s825_s24 }
  0x12   : > { %v576_v33 = vsub.s32 (!%p274_p9), 4, %v366_v29  ;;  %v584_v34 = vsub.s32 (!%p274_p9), 5, %v366_v29  ;;  %v367_v36 = vsub.s32 (!%p274_p9), 0, %v366_v29  ;;  %v391_v37 = vsub.s32 (!%p274_p9), 1, %v366_v29 }
  0x13   : > { %352 = vperm.xlu1 (!%p274_p9), %900, %v336_v3   ;;  %330 = vperm.xlu0 (!%p274_p9), %899, %v327_v4   ;;  %v596_v42 = vsub.s32 (!%p274_p9), 6, %v366_v29  ;;  %v608_v43 = vsub.s32 (!%p274_p9), 7, %v366_v29  ;;  %v419_v47 = vsub.s32 (!%p274_p9), 2, %v366_v29  ;;  %v447_v57 = vsub.s32 (!%p274_p9), 3, %v366_v29 }
  0x15   : > { %s310_s26 = scalar_select %p309_p10, %s1086_s9, 1 }
  0x16   : > { %s1019_s9 = smov [#allocation2]  }
  0x17   : > { %901 = vset.pattern.permute.xlu1 %v1014_v5  ;;  %903 = vset.pattern.permute.xlu0 %v1015_v6  ;;  %s813_s10 = sshll.u32 %s310_s26, 3  ;;  %s308_s26 = scalar_lea.vmem [#allocation2], %s307_s23 }
  0x18   : > { %378 = vperm.xlu1 %901, %v336_v3   ;;  %406 = vperm.xlu0 %903, %v336_v3   ;;  %s312_s17 = scalar_lea.vmem %s1307_s0, %s813_s10  ;;  %s316_s20 = scalar_lea.vmem %s1308_s1, %s813_s10 }
  0x19   : > { %v318_v25 = vld [vmem:[%s312_s17] sm:$0xff]  ;;  %s742_s10 = sshll.u32 %s308_s26, 4  ;;  %s953_s22 = sshll.u32 %s1019_s9, 4  ;;  %s1267_s10 = int_to_ptr.vmem [resolvable:$true] %s742_s10  ;;  %s954_s22 = int_to_ptr.vmem [resolvable:$false] %s953_s22 }
  0x1a   : > { %v1162_v26 = vld [vmem:[%s316_s20] sm:$0xff]  ;;  %s730_s20 = scalar_lea.sflag [#allocation3], %s307_s23  ;;  %s949_s21 = scalar_lea.vmem %s1267_s10, 16 }
  0x1b   : > { %p950_p11 = scmp.ne.s32.totalorder %s1267_s10, %s949_s21  ;;  %p956_p0 = scmp.lt.s32.totalorder %s1267_s10, %s954_s22 }
  0x1c   : > { %902 = vset.pattern.permute.xlu1 %v1015_v6  ;;  %907 = vset.pattern.permute.xlu0 %v1016_v7 }
  0x1d   : > { %402 = vperm.xlu1 %902, %v335_v0   ;;  %434 = vperm.xlu0 %907, %v336_v3   ;;  %p951_p12 = pnand %p950_p11, %p1103_p5 }
  0x1f   : > { %p952_p13 = pneg %p951_p12 }
  0x21   : > { %904 = vset.pattern.permute.xlu1 %v1013_v2  ;;  %438 = vperm.xlu0 %907, %v337_v8  }
  0x22   : > { %357 = vperm.xlu1 %904, %v337_v8  }
  0x25   : > { %909 = vset.pattern.permute.xlu0 %v1014_v5 }
  0x26   : > { %362 = vperm.xlu1 %904, %v338_v9   ;;  %374 = vperm.xlu0 %909, %v335_v0  }
  0x2a   : > { %905 = vset.pattern.permute.xlu1 %v1014_v5  ;;  %382 = vperm.xlu0 %909, %v337_v8  }
  0x2b   : > { %386 = vperm.xlu1 %905, %v338_v9  }
  0x2e   : > { %619 = vperm.xlu0 %909, %v339_v10  }
  0x2f   : > { %906 = vset.pattern.permute.xlu1 %v1016_v7 }
  0x30   : > { %430 = vperm.xlu1 %906, %v335_v0  }
  0x32   : > { %913 = vset.pattern.permute.xlu0 %v1013_v2 }
  0x33   : > { %464 = vperm.xlu0 %913, %v340_v11  }
  0x34   : > { %908 = vset.pattern.permute.xlu1 %v1015_v6 }
  0x35   : > { %410 = vperm.xlu1 %908, %v337_v8  }
  0x37   : > { %469 = vperm.xlu0 %913, %v341_v12  }
  0x39   : > { %414 = vperm.xlu1 %908, %v338_v9  }
  0x3b   : > { %513 = vperm.xlu0 %913, %v344_v13  }
  0x3d   : > { %910 = vset.pattern.permute.xlu1 %v1016_v7 }
  0x3e   : > { %442 = vperm.xlu1 %910, %v338_v9  }
  0x3f   : > { %916 = vset.pattern.permute.xlu0 %v1014_v5 }
  0x42   : > { %911 = vset.pattern.permute.xlu1 %v1014_v5 }
  0x43   : > { %623 = vperm.xlu1 %911, %v340_v11  }
  0x47   : > { %912 = vset.pattern.permute.xlu1 %v1013_v2 }
  0x48   : > { %459 = vperm.xlu1 %912, %v339_v10  }
  0x4c   : > { %914 = vset.pattern.permute.xlu1 %v1014_v5 }
  0x4d   : > { %627 = vperm.xlu1 %914, %v341_v12  }
  0x51   : > { %631 = vperm.xlu1 %914, %v342_v14  }
  0x55   : > { %915 = vset.pattern.permute.xlu1 %v1013_v2 }
  0x56   : > { %474 = vperm.xlu1 %915, %v342_v14  }
  0x8e   : > { %v1150_v16 = vpop.permute.xlu1 %347  ;;  %v324_v17 = vpop.permute.xlu0 %323 }
  0x8f   : > { %v326_v27 = vmul.f32 %v324_v17, %v318_v25 }
  0x92   : > { %v353_v18 = vpop.permute.xlu1 %352  ;;  %v331_v19 = vpop.permute.xlu0 %330 }
  0x93   : > { %v333_v28 = vmul.f32 %v331_v19, %v1162_v26 }
  0x95   : > { %v334_v32 = vadd.f32 %v333_v28, %v326_v27 }
  0x97   : > { %v379_v20 = vpop.permute.xlu1 %378  ;;  %v407_v21 = vpop.permute.xlu0 %406  ;;  %v1171_v39 = vrot.slane %v334_v32, %v576_v33  ;;  %v1173_v40 = vrot.slane %v334_v32, %v584_v34  ;;  %v1178_v45 = vrot.slane %v334_v32, %v367_v36  ;;  %v1180_v46 = vrot.slane %v334_v32, %v391_v37 }
  0x98   : > { %v1184_v49 = vrot.slane %v334_v32, %v596_v42  ;;  %v1186_v50 = vrot.slane %v334_v32, %v608_v43  ;;  %v1190_v56 = vrot.slane %v334_v32, %v419_v47  ;;  %v1196_v63 = vrot.slane %v334_v32, %v447_v57 }
  0x99   : > { %v578_v48 = vmul.f32 %v1171_v39, %v1150_v16  ;;  %v370_v54 = vmul.f32 %v1178_v45, %v353_v18  ;;  %v394_v55 = vmul.f32 %v1180_v46, %v379_v20  ;;  %v579_v1 = vmul.f32 %v1171_v39, %v353_v18 }
  0x9a   : > { %v422_v62 = vmul.f32 %v1190_v56, %v407_v21  ;;  %v587_v2 = vmul.f32 %v1173_v40, %v379_v20  ;;  %v599_v9 = vmul.f32 %v1184_v49, %v407_v21  ;;  %v369_v24 = vmul.f32 %v1178_v45, %v1150_v16 }
  0x9b   : > { %v398_v61 = vadd.f32 %v394_v55, %v370_v54 }
  0x9c   : > { %v1160_v22 = vpop.permute.xlu1 %402  ;;  %v435_v23 = vpop.permute.xlu0 %434  ;;  %v591_v8 = vadd.f32 %v587_v2, %v579_v1 }
  0x9d   : > { %v598_v58 = vmul.f32 %v1184_v49, %v1160_v22  ;;  %v426_v5 = vadd.f32 %v422_v62, %v398_v61  ;;  %v450_v6 = vmul.f32 %v1196_v63, %v435_v23  ;;  %v611_v17 = vmul.f32 %v1186_v50, %v435_v23 }
  0x9e   : > { %v603_v14 = vadd.f32 %v599_v9, %v591_v8  ;;  %v421_v33 = vmul.f32 %v1190_v56, %v1160_v22 }
  0x9f   : > { %v454_v13 = vadd.f32 %v450_v6, %v426_v5 }
  0xa0   : > { %v1167_v31 = vpop.permute.xlu0 %438  ;;  %v615_v23 = vadd.f32 %v611_v17, %v603_v14 }
  0xa1   : > { %v1165_v30 = vpop.permute.xlu1 %357  ;;  %v451_v47 = vmul.f32 %v1196_v63, %v1167_v31 }
  0xa2   : > { %v371_v21 = vmul.f32 %v1178_v45, %v1165_v30  ;;  %v580_v37 = vmul.f32 %v1171_v39, %v1165_v30 }
  0xa5   : > { %v1169_v35 = vpop.permute.xlu1 %362  ;;  %v375_v38 = vpop.permute.xlu0 %374 }
  0xa6   : > { %v586_v44 = vmul.f32 %v1173_v40, %v375_v38  ;;  %v393_v12 = vmul.f32 %v1180_v46, %v375_v38 }
  0xa8   : > { %v590_v51 = vadd.f32 %v586_v44, %v578_v48  ;;  %v397_v28 = vadd.f32 %v393_v12, %v369_v24 }
  0xa9   : > { %v383_v52 = vpop.permute.xlu0 %382 }
  0xaa   : > { %v1175_v41 = vpop.permute.xlu1 %386  ;;  %v602_v60 = vadd.f32 %v598_v58, %v590_v51  ;;  %v395_v18 = vmul.f32 %v1180_v46, %v383_v52  ;;  %v588_v32 = vmul.f32 %v1173_v40, %v383_v52  ;;  %v425_v44 = vadd.f32 %v421_v33, %v397_v28 }
  0xab   : > { %v589_v52 = vmul.f32 %v1173_v40, %v1175_v41  ;;  %v612_v58 = vmul.f32 %v1186_v50, %v1167_v31 }
  0xac   : > { %v399_v29 = vadd.f32 %v395_v18, %v371_v21  ;;  %v592_v48 = vadd.f32 %v588_v32, %v580_v37 }
  0xad   : > { %v620_v3 = vpop.permute.xlu0 %619 }
  0xaf   : > { %v431_v53 = vpop.permute.xlu1 %430 }
  0xb0   : > { %v610_v59 = vmul.f32 %v1186_v50, %v431_v53  ;;  %v449_v34 = vmul.f32 %v1196_v63, %v431_v53 }
  0xb2   : > { %v614_v4 = vadd.f32 %v610_v59, %v602_v60  ;;  %v465_v11 = vpop.permute.xlu0 %464  ;;  %v453_v51 = vadd.f32 %v449_v34, %v425_v44  ;;  %v581_v59 = vmul.f32 %v1171_v39, %v1169_v35  ;;  %v372_v39 = vmul.f32 %v1178_v45, %v1169_v35 }
  0xb3   : > { %v1210_v25 = vadd.f32 %v465_v11, %v454_v13 }
  0xb4   : > { %v411_v0 = vpop.permute.xlu1 %410  ;;  %v1202_v10 = vadd.f32 %v620_v3, %v614_v4  ;;  %v396_v3 = vmul.f32 %v1180_v46, %v1175_v41 }
  0xb5   : > { %v423_v27 = vmul.f32 %v1190_v56, %v411_v0  ;;  %v816_v16 = vmul.f32 -1.442695, %v1210_v25  ;;  %v600_v42 = vmul.f32 %v1184_v49, %v411_v0  ;;  %v593_v0 = vadd.f32 %v589_v52, %v581_v59 }
  0xb6   : > { %v820_v20 = vmul.f32 -1.442695, %v1202_v10  ;;  %v470_v55 = vpop.permute.xlu0 %469 }
  0xb7   : > { %v427_v38 = vadd.f32 %v423_v27, %v399_v29  ;;  %v604_v53 = vadd.f32 %v600_v42, %v592_v48 }
  0xb8   : > { %v415_v7 = vpop.permute.xlu1 %414  ;;  %917 = vpow2.f32 %v820_v20 }
  0xb9   : > { %919 = vpow2.f32 %v816_v16  ;;  %v455_v54 = vadd.f32 %v451_v47, %v427_v38  ;;  %v601_v60 = vmul.f32 %v1184_v49, %v415_v7  ;;  %v616_v2 = vadd.f32 %v612_v58, %v604_v53 }
  0xba   : > { %v424_v49 = vmul.f32 %v1190_v56, %v415_v7 }
  0xbb   : > { %v1238_v40 = vadd.f32 %v470_v55, %v455_v54  ;;  %v605_v5 = vadd.f32 %v601_v60, %v593_v0 }
  0xbd   : > { %v443_v19 = vpop.permute.xlu1 %442  ;;  %v817_v8 = vmul.f32 -1.442695, %v1238_v40 }
  0xbe   : > { %v613_v1 = vmul.f32 %v1186_v50, %v443_v19  ;;  %v400_v50 = vadd.f32 %v396_v3, %v372_v39  ;;  %v452_v13 = vmul.f32 %v1196_v63, %v443_v19 }
  0xc0   : > { %v617_v11 = vadd.f32 %v613_v1, %v605_v5  ;;  %v428_v17 = vadd.f32 %v424_v49, %v400_v50 }
  0xc2   : > { %v624_v36 = vpop.permute.xlu1 %623  ;;  %v918_v62 = vpop.eup %917  ;;  %v456_v56 = vadd.f32 %v452_v13, %v428_v17 }
  0xc3   : > { %v1223_v43 = vadd.f32 %v624_v36, %v615_v23  ;;  %v650_v6 = vadd.f32 1.0, %v918_v62  ;;  %v920_v12 = vpop.eup %919 }
  0xc4   : > { %v494_v45 = vadd.f32 1.0, %v920_v12 }
  0xc5   : > { %v821_v22 = vmul.f32 -1.442695, %v1223_v43 }
  0xc7   : > { %921 = vpow2.f32 %v821_v22  ;;  %v460_v30 = vpop.permute.xlu1 %459 }
  0xc8   : > { %v1230_v57 = vadd.f32 %v460_v30, %v453_v51 }
  0xca   : > { %v815_v61 = vmul.f32 -1.442695, %v1230_v57 }
  0xcc   : > { %v628_v4 = vpop.permute.xlu1 %627  ;;  %923 = vpow2.f32 %v815_v61 }
  0xcd   : > { %v636_v31 = vadd.f32 %v628_v4, %v616_v2 }
  0xcf   : > { %v822_v9 = vmul.f32 -1.442695, %v636_v31 }
  0xd0   : > { %v632_v14 = vpop.permute.xlu1 %631 }
  0xd1   : > { %v922_v41 = vpop.eup %921  ;;  %925 = vpow2.f32 %v822_v9  ;;  %v637_v46 = vadd.f32 %v632_v14, %v617_v11 }
  0xd2   : > { %v651_v18 = vadd.f32 1.0, %v922_v41  ;;  %927 = vrcp.f32 %v650_v6 }
  0xd3   : > { %929 = vpow2.f32 %v817_v8  ;;  %v823_v35 = vmul.f32 -1.442695, %v637_v46 }
  0xd4   : > { %931 = vrcp.f32 %v651_v18 }
  0xd5   : > { %933 = vpow2.f32 %v823_v35  ;;  %v475_v7 = vpop.permute.xlu1 %474 }
  0xd6   : > { %v480_v20 = vadd.f32 %v475_v7, %v456_v56  ;;  %v924_v24 = vpop.eup %923  ;;  %935 = vrcp.f32 %v494_v45 }
  0xd7   : > { %v493_v21 = vadd.f32 1.0, %v924_v24 }
  0xd8   : > { %v818_v27 = vmul.f32 -1.442695, %v480_v20 }
  0xd9   : > { %937 = vrcp.f32 %v493_v21 }
  0xda   : > { %939 = vpow2.f32 %v818_v27 }
  0xdb   : > { %v926_v63 = vpop.eup %925 }
  0xdc   : > { %v928_v19 = vpop.eup %927  ;;  %v652_v28 = vadd.f32 1.0, %v926_v63 }
  0xdd   : > { %v930_v29 = vpop.eup %929  ;;  %v662_v34 = vmul.f32 %v928_v19, %v1202_v10 }
  0xde   : > { %v932_v32 = vpop.eup %931  ;;  %941 = vrcp.f32 %v652_v28  ;;  %v495_v38 = vadd.f32 1.0, %v930_v29 }
  0xdf   : > { %v934_v23 = vpop.eup %933  ;;  %v663_v33 = vmul.f32 %v932_v32, %v1223_v43 }
  0xe0   : > { %v653_v16 = vadd.f32 1.0, %v934_v23  ;;  %v936_v37 = vpop.eup %935 }
  0xe1   : > { %v666_v36 = vpack.c.bf16 %v663_v33, %v662_v34  ;;  %v506_v47 = vmul.f32 %v936_v37, %v1210_v25  ;;  %v343_v25 = vld [vmem:[%s1313_s6] sm:$0x3] }
  0xe2   : > { %943 = vrcp.f32 %v653_v16 }
  0xe3   : > { %843 = vmatpush3.bf16.msra.mxu1 %v666_v36  ;;  %v938_v42 = vpop.eup %937  ;;  %945 = vrcp.f32 %v495_v38 }
  0xe4   : > { %844 = vmatprep.subr.bf16.mxu1 %v1017_v15  ;;  %v940_v44 = vpop.eup %939  ;;  %v505_v48 = vmul.f32 %v938_v42, %v1230_v57 }
  0xe5   : > { %v496_v22 = vadd.f32 1.0, %v940_v44 }
  0xe6   : > { %v509_v43 = vpack.c.bf16 %v506_v47, %v505_v48 }
  0xe7   : > { %947 = vrcp.f32 %v496_v22 }
  0xe8   : > { %835 = vmatpush3.bf16.msra.mxu0 %v509_v43  ;;  %v942_v10 = vpop.eup %941 }
  0xe9   : > { %836 = vmatprep.subr.bf16.mxu0 %v1017_v15  ;;  %v664_v52 = vmul.f32 %v942_v10, %v636_v31  ;;  %v514_v15 = vpop.permute.xlu0 %513 }
  0xec   : > { %v944_v51 = vpop.eup %943 }
  0xed   : > { %v665_v53 = vmul.f32 %v944_v51, %v637_v46  ;;  %v946_v30 = vpop.eup %945 }
  0xee   : > { %v507_v57 = vmul.f32 %v946_v30, %v1238_v40 }
  0xef   : > { %v667_v54 = vpack.c.bf16 %v665_v53, %v664_v52 }
  0xf1   : > { %845 = vmatpush3.bf16.msra.mxu1 %v667_v54  ;;  %v948_v55 = vpop.eup %947 }
  0xf2   : > { %v508_v58 = vmul.f32 %v948_v55, %v480_v20 }
  0xf4   : > { %847 = vmatmul.mubr.msk.bf16.vlgmr.msra.gmra.mrb[0].mxu1 %vm516_vm1, %v343_v25  ;;  %v510_v59 = vpack.c.bf16 %v508_v58, %v507_v57 }
  0xf6   : > { %837 = vmatpush3.bf16.msra.mxu0 %v510_v59 }
  0xf9   : > { %839 = vmatmul.mubr.msk.bf16.vlgmr.msra.gmra.mrb[0].mxu0 %vm516_vm1, %v343_v25 }
 0x1c7   : > { %v702_v60 = vpop.f32.mrb[0].mxu1 }
 0x1c8   : > { %v703_v61 = vadd.f32 %v702_v60, %v514_v15  ;;  %v848_v62 = vpop.f32.mrb[1].mxu1 }
 0x1c9   : > { %v705_v0 = vpop.f32.mrb[2].mxu1 }
 0x1ca   : > { %v709_v1 = vrot.slane %v703_v61, 4  ;;  %v849_v2 = vpop.f32.mrb[3].mxu1 }
 0x1cc   : > { %v711_v3 = vsub.f32 %v1162_v26, %v709_v1  ;;  %v554_v4 = vpop.f32.mrb[0].mxu0 }
 0x1cd   : > { %v555_v5 = vadd.f32 %v554_v4, %v514_v15  ;;  %v840_v31 = vpop.f32.mrb[1].mxu0 }
 0x1ce   : > { %v712_v39 = vmul.f32 %v711_v3, %v711_v3  ;;  %v557_v49 = vpop.f32.mrb[2].mxu0 }
 0x1cf   : > { %v560_v40 = vsub.f32 %v1162_v26, %v555_v5  ;;  %v841_v6 = vpop.f32.mrb[3].mxu0 }
 0x1d0   : > { %v714_v8 = vrot.slane %v712_v39, 4 }
 0x1d1   : > { %v561_v11 = vmul.f32 %v560_v40, %v560_v40 }
 0x1d2   : > { %v716_v9 = vsel %vm562_vm2, %v714_v8, 0.0 }
 0x1d3   : > { %717 = vadd.xlane.f32.xlu0 %v716_v9  ;;  %v563_v12 = vsel %vm562_vm2, %v561_v11, 0.0 }
 0x1d4   : > { %564 = vadd.xlane.f32.xlu1 %v563_v12 }
 0x260   : > { %v718_v50 = vpop.xlane.xlu0 %717 }
 0x261   : > { %v719_v13 = vrot.slane %v718_v50, 4  ;;  %v565_v14 = vpop.xlane.xlu1 %564 }
 0x262   : > { %v566_v46 = vrot.slane %v565_v14, 4 }
 0x263   : > { %v720_v41 = vadd.f32 %v719_v13, %v718_v50 }
 0x264   : > { %v567_v18 = vadd.f32 %v566_v46, %v565_v14 }
 0x265   : > { %v721_v17 = vrot.slane %v720_v41, 2 }
 0x266   : > { %v568_v45 = vrot.slane %v567_v18, 2 }
 0x267   : > { %v722_v35 = vadd.f32 %v721_v17, %v720_v41 }
 0x268   : > { %v569_v56 = vadd.f32 %v568_v45, %v567_v18 }
 0x269   : > { %v723_v26 = vrot.slane %v722_v35, 1 }
 0x26a   : > { %v570_v7 = vrot.slane %v569_v56, 1 }
 0x26b   : > { %v724_v20 = vadd.f32 %v723_v26, %v722_v35 }
 0x26c   : > { %v571_v24 = vadd.f32 %v570_v7, %v569_v56 }
 0x26e   : > { %850 = vpush %v571_v24 }
 0x26f   : > { %852 = vpush %v724_v20 }
 0x29f   : > { %s851_s25 = spop %850 }
 0x2a0   : > { %s853_s12 = spop %852 }
 0x2a1   : > { %s726_s13 = sadd.f32 %s853_s12, %s851_s25  ;;  %s955_s25 = scalar_lea.vmem %s954_s22, 32 }
 0x2a2   : > { %p957_p1 = scmp.lt.s32.totalorder %s955_s25, %s949_s21 }
 0x2a3   : > { %v727_v21 = vstv %s726_s13 }
 0x2a4   : > { %728 = vst [vmem:[%s308_s26] sm:$0x1] %v727_v21  ;;  %p958_p2 = por %p957_p1, %p956_p0 }
 0x2a6   : > { %p959_p3 = pnand %p958_p2, %p952_p13 }
 0x2a8   : > { %962 = shalt.err (!%p959_p3)
}
 0x2a9   : > { %s963_s23 = scalar_lea.hbm %s1265_s19, 16  ;;  %s967_s12 = scalar_lea.hbm %s1315_s8, 32 }
 0x2aa   : > { %p964_p4 = scmp.ne.s32.totalorder %s1265_s19, %s963_s23  ;;  %p968_p9 = scmp.lt.u32.totalorder %s1265_s19, %s1315_s8 }
 0x2ab   : > { %p969_p10 = scmp.lt.u32.totalorder %s967_s12, %s963_s23  ;;  %p971_p12 = scmp.lt.u32.totalorder %s963_s23, %s1265_s19 }
 0x2ac   : > { %p965_p7 = pnand %p964_p4, %p1103_p5 }
 0x2ad   : > { %p970_p11 = por %p969_p10, %p968_p9 }
 0x2ae   : > { %p966_p8 = pneg %p965_p7 }
 0x2af   : > { %p972_p13 = por %p971_p12, %p970_p11 }
 0x2b1   : > { %p973_p0 = pnand %p972_p13, %p966_p8 }
 0x2b3   : > { %976 = shalt.err (!%p973_p0)
}
 0x2b4   : > { %854 = dma.vmem_to_hbm [thread:$0]  (%p1103_p5), %s1267_s10, 16, %s1265_s19, %s730_s20  }
 0x2b5 PF: > { %p860_p1 = scmp.ge.s32.totalorder %s1011_s30, 2  ;;  %s754_s18 = sand.u32 1, %s999_s27  }
 0x2b6   : > { %s755_s21 = scalar_lea.sflag [#allocation3], %s754_s18 }
 0x2b7   : > { %p857_p2 = pnand %p860_p1, %p1107_p6 }
 0x2b9   : > { %994 = dma.done.wait (!%p857_p2), %s755_s21, 16  }
 0x2ba   : > { %996 = vsyncadd (!%p857_p2), %s755_s21, 4294967280  ;;  %p18_p3 = scmp.ge.s32.totalorder %s1090_s11, 4   ;;  %s1318_s27 = smov %s1003_s28 }
 0x2bb   : > { %s1319_s28 = smov %s1007_s29  ;;  %s1320_s29 = smov %s1101_s14 }
 0x2bc   : > { %s1321_s30 = smov %s1090_s11  ;;  %20 = sbr.rel (!%p18_p3) target bundleno = 3 (0x3), region = 90 }
 0x2c3   :  { %759 = vsyncpa [#allocation3], 1 }
 0x2c4   :  { %761 = vsyncpa [#allocation3 + $0x1], 1 }

</bundles_post_ra>
